<compile_context>
chip_gen: v6e
topology: v6e:2x2x1
jax: 0.10.0
libtpu: 0.0.40
codegen_flags: <defaults>
</compile_context>

<pallas_src>
import jax
import jax.numpy as jnp
from jax import lax
from jax.experimental import pallas as pl
from jax.experimental.pallas import tpu as pltpu

_LANES = 128
_XLA_FASTPATH_MAX_B = 1024  # single-tile batches: plain XLA beats kernel launch


def _round_up(n, m):
    return ((n + m - 1) // m) * m


def _mlp4_kernel(x_ref, w1t_ref, b1_ref, w2t_ref, b2_ref, w3t_ref, b3_ref,
                 w4_ref, b4_ref, o_ref):
    h = jnp.maximum(
        jnp.dot(x_ref[...], w1t_ref[...],
                preferred_element_type=jnp.float32) + b1_ref[...], 0.0)
    h = jnp.maximum(
        jnp.dot(h.astype(w2t_ref.dtype), w2t_ref[...],
                preferred_element_type=jnp.float32) + b2_ref[...], 0.0)
    h = jnp.maximum(
        jnp.dot(h.astype(w3t_ref.dtype), w3t_ref[...],
                preferred_element_type=jnp.float32) + b3_ref[...], 0.0)
    # Final layer computed transposed: (2, Fp) x (tb, Fp) contracted on Fp
    # gives (2, tb) -> output is lane-dense along batch (no zero-padded HBM
    # writeback, no masked vst).
    o_ref[...] = lax.dot_general(
        w4_ref[...], h.astype(w4_ref.dtype), (((1,), (1,)), ((), ())),
        preferred_element_type=jnp.float32) + b4_ref[...]


def _xla_forward(x, w1, b1, w2, b2, w3, b3, w4, b4):
    h = jnp.maximum(x @ w1.T + b1, 0.0)
    h = jnp.maximum(h @ w2.T + b2, 0.0)
    h = jnp.maximum(h @ w3.T + b3, 0.0)
    return h @ w4.T + b4


def mlp4_forward(x, params, alpha=None, r2=None, *, tb=None, use_bf16=False):
    """x: (B, inputs) f32. params: (w1,b1,w2,b2,w3,b3,w4,b4) in nn.Linear
    layout (weight=(out,in), bias=(out,)). alpha/r2 unused (API parity)."""
    del alpha, r2  # MLP4.forward ignores them
    w1, b1, w2, b2, w3, b3, w4, b4 = params
    x = jnp.asarray(x, jnp.float32)
    B, D = x.shape
    F_ = w1.shape[0]
    assert w1.shape == (F_, D) and w2.shape == (F_, F_) and w3.shape == (F_, F_)
    assert w4.shape == (2, F_) and b4.shape == (2,)

    # ---- small-batch fast path: one tile => nothing to pipeline ------------
    if tb is None and B <= _XLA_FASTPATH_MAX_B:
        return _xla_forward(x, *(jnp.asarray(p, jnp.float32) for p in params))

    # ---- batch tiling (lane-dense (2, tb) output blocks => tb % 128 == 0) --
    if tb is None:
        tb = min(2048, _round_up(B, _LANES))
        # Ensure >= 2 grid steps so "parallel" can shard over v7x's 2 TCs.
        tb = min(tb, _round_up(pl.cdiv(B, 2), _LANES))
    tb = _round_up(int(tb), _LANES)
    b_pad = _round_up(B, tb)
    if b_pad != B:
        x = jnp.pad(x, ((0, b_pad - B), (0, 0)))
    grid = (b_pad // tb,)

    # ---- weight-only prep, hoisted out of the per-tile hot path ------------
    # Pad the hidden feature dim to a lane multiple (weight-side only; x's
    # HBM read width stays D).  Zero padding is exactly zero-contributing.
    Fp = _round_up(F_, _LANES)
    wt_dtype = jnp.bfloat16 if use_bf16 else jnp.float32
    pad_cols = ((0, 0), (0, Fp - F_))
    pad_both = ((0, Fp - F_), (0, Fp - F_))
    w1t = jnp.pad(jnp.asarray(w1, jnp.float32).T, pad_cols).astype(wt_dtype)   # (D, Fp)
    w2t = jnp.pad(jnp.asarray(w2, jnp.float32).T, pad_both).astype(wt_dtype)   # (Fp, Fp)
    w3t = jnp.pad(jnp.asarray(w3, jnp.float32).T, pad_both).astype(wt_dtype)   # (Fp, Fp)
    w4p = jnp.pad(jnp.asarray(w4, jnp.float32), pad_cols).astype(wt_dtype)     # (2, Fp)
    b1r = jnp.pad(jnp.asarray(b1, jnp.float32).reshape(1, F_), pad_cols)       # (1, Fp)
    b2r = jnp.pad(jnp.asarray(b2, jnp.float32).reshape(1, F_), pad_cols)
    b3r = jnp.pad(jnp.asarray(b3, jnp.float32).reshape(1, F_), pad_cols)
    b4c = jnp.asarray(b4, jnp.float32).reshape(2, 1)                           # (2, 1)
    if use_bf16:
        x = x.astype(jnp.bfloat16)

    # ---- honest VMEM accounting (2 buffers per operand, incl. resident) ----
    item = 2 if use_bf16 else 4
    wt_bytes = (D * Fp + 2 * Fp * Fp + 2 * Fp) * item
    bias_bytes = (3 * Fp + 2) * 4
    buf_bytes = 2 * (tb * D * item + 2 * tb * 4 + wt_bytes + bias_bytes)
    scratch_bytes = 3 * tb * Fp * 4          # live f32 intermediates
    try:
        vmem_cap = int(getattr(pltpu.get_tpu_info(), "vmem_capacity_bytes",
                               64 << 20))
    except Exception:
        vmem_cap = 64 << 20                  # v7x per-TC size (smallest gen)
    vmem_ceiling = vmem_cap * 3 // 4         # ~48 MiB v7x, ~96 MiB v5e/v6e
    vmem_limit = int(min(vmem_ceiling,
                         max(32 << 20, buf_bytes + scratch_bytes)))

    const = lambda i: (0, 0)  # weights/biases: same block every grid step

    out = pl.pallas_call(
        _mlp4_kernel,
        out_shape=jax.ShapeDtypeStruct((2, b_pad), jnp.float32),
        grid=grid,
        in_specs=[
            pl.BlockSpec((tb, D), lambda i: (i, 0)),   # x batch tile
            pl.BlockSpec((D, Fp), const),              # fc1.weight.T (F-padded)
            pl.BlockSpec((1, Fp), const),              # fc1.bias
            pl.BlockSpec((Fp, Fp), const),             # fc2.weight.T
            pl.BlockSpec((1, Fp), const),              # fc2.bias
            pl.BlockSpec((Fp, Fp), const),             # fc3.weight.T
            pl.BlockSpec((1, Fp), const),              # fc3.bias
            pl.BlockSpec((2, Fp), const),              # fc4.weight (2, Fp)
            pl.BlockSpec((2, 1), const),               # fc4.bias as a column
        ],
        out_specs=pl.BlockSpec((2, tb), lambda i: (0, i)),
        compiler_params=pltpu.CompilerParams(
            dimension_semantics=("parallel",),
            vmem_limit_bytes=vmem_limit),
    )(x, w1t, b1r, w2t, b2r, w3t, b3r, w4p, b4c)

    return out[:, :B].T  # (B, 2)


if __name__ == "__main__":
    key = jax.random.PRNGKey(0)
    keys = jax.random.split(key, 10)

    inputs, features = 16, 32
    s = 0.1
    # Same shapes as the nn.Linear parameters of MLP4(inputs, features).
    w1 = jax.random.normal(keys[1], (features, inputs), jnp.float32) * s
    b1 = jax.random.normal(keys[2], (features,), jnp.float32) * s
    w2 = jax.random.normal(keys[3], (features, features), jnp.float32) * s
    b2 = jax.random.normal(keys[4], (features,), jnp.float32) * s
    w3 = jax.random.normal(keys[5], (features, features), jnp.float32) * s
    b3 = jax.random.normal(keys[6], (features,), jnp.float32) * s
    w4 = jax.random.normal(keys[7], (2, features), jnp.float32) * s
    b4 = jax.random.normal(keys[8], (2,), jnp.float32) * s
    params = (w1, b1, w2, b2, w3, b3, w4, b4)

    alpha, r2 = 0.5, 2.0  # forward() arguments that MLP4 ignores

    # --- Pallas kernel path: multi-tile batch grid (4 steps of 128 rows) ---
    B = 512
    x = jax.random.normal(keys[0], (B, inputs), dtype=jnp.float32)
    out = mlp4_forward(x, params, alpha, r2, tb=128)
    jax.block_until_ready(out)
    ref = _xla_forward(x, *params)
    assert out.shape == (B, 2)
    assert jnp.allclose(out, ref, atol=1e-4, rtol=1e-4)

    # --- tiny-batch fast path (the PyTorch-sized B=8 case) -----------------
    xs = jax.random.normal(keys[9], (8, inputs), dtype=jnp.float32)
    outs = mlp4_forward(xs, params, alpha, r2)
    jax.block_until_ready(outs)
    refs = _xla_forward(xs, *params)
    assert outs.shape == (8, 2)
    assert jnp.allclose(outs, refs, atol=1e-4, rtol=1e-4)

    print("KERNEL_OK")
</pallas_src>

<mosaic_0001>
module attributes {stable_mosaic.version = 11 : i64} {
  func.func @_mlp4_kernel(%arg0: i32, %arg1: memref<128x16xf32, #tpu.memory_space<vmem>>, %arg2: memref<16x128xf32, #tpu.memory_space<vmem>>, %arg3: memref<1x128xf32, #tpu.memory_space<vmem>>, %arg4: memref<128x128xf32, #tpu.memory_space<vmem>>, %arg5: memref<1x128xf32, #tpu.memory_space<vmem>>, %arg6: memref<128x128xf32, #tpu.memory_space<vmem>>, %arg7: memref<1x128xf32, #tpu.memory_space<vmem>>, %arg8: memref<2x128xf32, #tpu.memory_space<vmem>>, %arg9: memref<2x1xf32, #tpu.memory_space<vmem>>, %arg10: memref<2x128xf32, #tpu.memory_space<vmem>>) attributes {dimension_semantics = [#tpu.dimension_semantics<parallel>], iteration_bounds = array<i64: 4>, scalar_prefetch = 0 : i64, scratch_operands = 0 : i64, tpu.core_type = #tpu.core_type<tc>, window_params = [{transform_indices = @transform_0, window_bounds = array<i64: 128, 16>}, {pipeline_mode = #tpu.pipeline_mode<synchronous>, transform_indices = @transform_1, window_bounds = array<i64: 16, 128>}, {pipeline_mode = #tpu.pipeline_mode<synchronous>, transform_indices = @transform_2, window_bounds = array<i64: 1, 128>}, {pipeline_mode = #tpu.pipeline_mode<synchronous>, transform_indices = @transform_3, window_bounds = array<i64: 128, 128>}, {pipeline_mode = #tpu.pipeline_mode<synchronous>, transform_indices = @transform_4, window_bounds = array<i64: 1, 128>}, {pipeline_mode = #tpu.pipeline_mode<synchronous>, transform_indices = @transform_5, window_bounds = array<i64: 128, 128>}, {pipeline_mode = #tpu.pipeline_mode<synchronous>, transform_indices = @transform_6, window_bounds = array<i64: 1, 128>}, {pipeline_mode = #tpu.pipeline_mode<synchronous>, transform_indices = @transform_7, window_bounds = array<i64: 2, 128>}, {pipeline_mode = #tpu.pipeline_mode<synchronous>, transform_indices = @transform_8, window_bounds = array<i64: 2, 1>}, {transform_indices = @transform_9, window_bounds = array<i64: 2, 128>}]} {
    %c0 = arith.constant 0 : index
    %c0_0 = arith.constant 0 : index
    %0 = vector.load %arg1[%c0, %c0_0] : memref<128x16xf32, #tpu.memory_space<vmem>>, vector<128x16xf32>
    %c0_1 = arith.constant 0 : index
    %c0_2 = arith.constant 0 : index
    %1 = vector.load %arg2[%c0_1, %c0_2] : memref<16x128xf32, #tpu.memory_space<vmem>>, vector<16x128xf32>
    %cst = arith.constant dense<0.000000e+00> : vector<128x128xf32>
    %2 = tpu.matmul %0, %1, %cst {dimension_numbers = #tpu.dot_dimension_numbers<[1], [0], [0], [1], [0, 0, 1, 1], [], []>} : vector<128x16xf32>, vector<16x128xf32>, vector<128x128xf32> -> vector<128x128xf32>
    %c0_3 = arith.constant 0 : index
    %c0_4 = arith.constant 0 : index
    %3 = vector.load %arg3[%c0_3, %c0_4] : memref<1x128xf32, #tpu.memory_space<vmem>>, vector<1x128xf32>
    %4 = vector.broadcast %3 : vector<1x128xf32> to vector<128x128xf32>
    %5 = arith.addf %2, %4 : vector<128x128xf32>
    %cst_5 = arith.constant 0.000000e+00 : f32
    %6 = vector.broadcast %cst_5 : f32 to vector<128x128xf32>
    %7 = arith.maximumf %5, %6 : vector<128x128xf32>
    %c0_6 = arith.constant 0 : index
    %c0_7 = arith.constant 0 : index
    %8 = vector.load %arg4[%c0_6, %c0_7] : memref<128x128xf32, #tpu.memory_space<vmem>>, vector<128x128xf32>
    %cst_8 = arith.constant dense<0.000000e+00> : vector<128x128xf32>
    %9 = tpu.matmul %7, %8, %cst_8 {dimension_numbers = #tpu.dot_dimension_numbers<[1], [0], [0], [1], [0, 0, 1, 1], [], []>} : vector<128x128xf32>, vector<128x128xf32>, vector<128x128xf32> -> vector<128x128xf32>
    %c0_9 = arith.constant 0 : index
    %c0_10 = arith.constant 0 : index
    %10 = vector.load %arg5[%c0_9, %c0_10] : memref<1x128xf32, #tpu.memory_space<vmem>>, vector<1x128xf32>
    %11 = vector.broadcast %10 : vector<1x128xf32> to vector<128x128xf32>
    %12 = arith.addf %9, %11 : vector<128x128xf32>
    %cst_11 = arith.constant 0.000000e+00 : f32
    %13 = vector.broadcast %cst_11 : f32 to vector<128x128xf32>
    %14 = arith.maximumf %12, %13 : vector<128x128xf32>
    %c0_12 = arith.constant 0 : index
    %c0_13 = arith.constant 0 : index
    %15 = vector.load %arg6[%c0_12, %c0_13] : memref<128x128xf32, #tpu.memory_space<vmem>>, vector<128x128xf32>
    %cst_14 = arith.constant dense<0.000000e+00> : vector<128x128xf32>
    %16 = tpu.matmul %14, %15, %cst_14 {dimension_numbers = #tpu.dot_dimension_numbers<[1], [0], [0], [1], [0, 0, 1, 1], [], []>} : vector<128x128xf32>, vector<128x128xf32>, vector<128x128xf32> -> vector<128x128xf32>
    %c0_15 = arith.constant 0 : index
    %c0_16 = arith.constant 0 : index
    %17 = vector.load %arg7[%c0_15, %c0_16] : memref<1x128xf32, #tpu.memory_space<vmem>>, vector<1x128xf32>
    %18 = vector.broadcast %17 : vector<1x128xf32> to vector<128x128xf32>
    %19 = arith.addf %16, %18 : vector<128x128xf32>
    %cst_17 = arith.constant 0.000000e+00 : f32
    %20 = vector.broadcast %cst_17 : f32 to vector<128x128xf32>
    %21 = arith.maximumf %19, %20 : vector<128x128xf32>
    %c0_18 = arith.constant 0 : index
    %c0_19 = arith.constant 0 : index
    %22 = vector.load %arg8[%c0_18, %c0_19] : memref<2x128xf32, #tpu.memory_space<vmem>>, vector<2x128xf32>
    %cst_20 = arith.constant dense<0.000000e+00> : vector<2x128xf32>
    %23 = tpu.matmul %22, %21, %cst_20 {dimension_numbers = #tpu.dot_dimension_numbers<[1], [1], [0], [0], [0, 0, 1, 0], [], []>} : vector<2x128xf32>, vector<128x128xf32>, vector<2x128xf32> -> vector<2x128xf32>
    %c0_21 = arith.constant 0 : index
    %c0_22 = arith.constant 0 : index
    %24 = vector.load %arg9[%c0_21, %c0_22] : memref<2x1xf32, #tpu.memory_space<vmem>>, vector<2x1xf32>
    %25 = vector.broadcast %24 : vector<2x1xf32> to vector<2x128xf32>
    %26 = arith.addf %23, %25 : vector<2x128xf32>
    %c0_23 = arith.constant 0 : index
    %c0_24 = arith.constant 0 : index
    %27 = vector.load %arg10[%c0_23, %c0_24] : memref<2x128xf32, #tpu.memory_space<vmem>>, vector<2x128xf32>
    tpu.vector_store %arg10[%c0_23, %c0_24], %26 {strides = array<i32>} : memref<2x128xf32, #tpu.memory_space<vmem>>, vector<2x128xf32>,
    return
  }
  func.func @transform_0(%arg0: i32) -> (i32, i32) {
    %c0_i32 = arith.constant 0 : i32
    %c0_i32_0 = arith.constant 0 : i32
    return %arg0, %c0_i32 : i32, i32
  }
  func.func @transform_1(%arg0: i32) -> (i32, i32) {
    %c0_i32 = arith.constant 0 : i32
    %c0_i32_0 = arith.constant 0 : i32
    %c0_i32_1 = arith.constant 0 : i32
    return %c0_i32, %c0_i32_0 : i32, i32
  }
  func.func @transform_2(%arg0: i32) -> (i32, i32) {
    %c0_i32 = arith.constant 0 : i32
    %c0_i32_0 = arith.constant 0 : i32
    %c0_i32_1 = arith.constant 0 : i32
    return %c0_i32, %c0_i32_0 : i32, i32
  }
  func.func @transform_3(%arg0: i32) -> (i32, i32) {
    %c0_i32 = arith.constant 0 : i32
    %c0_i32_0 = arith.constant 0 : i32
    %c0_i32_1 = arith.constant 0 : i32
    return %c0_i32, %c0_i32_0 : i32, i32
  }
  func.func @transform_4(%arg0: i32) -> (i32, i32) {
    %c0_i32 = arith.constant 0 : i32
    %c0_i32_0 = arith.constant 0 : i32
    %c0_i32_1 = arith.constant 0 : i32
    return %c0_i32, %c0_i32_0 : i32, i32
  }
  func.func @transform_5(%arg0: i32) -> (i32, i32) {
    %c0_i32 = arith.constant 0 : i32
    %c0_i32_0 = arith.constant 0 : i32
    %c0_i32_1 = arith.constant 0 : i32
    return %c0_i32, %c0_i32_0 : i32, i32
  }
  func.func @transform_6(%arg0: i32) -> (i32, i32) {
    %c0_i32 = arith.constant 0 : i32
    %c0_i32_0 = arith.constant 0 : i32
    %c0_i32_1 = arith.constant 0 : i32
    return %c0_i32, %c0_i32_0 : i32, i32
  }
  func.func @transform_7(%arg0: i32) -> (i32, i32) {
    %c0_i32 = arith.constant 0 : i32
    %c0_i32_0 = arith.constant 0 : i32
    %c0_i32_1 = arith.constant 0 : i32
    return %c0_i32, %c0_i32_0 : i32, i32
  }
  func.func @transform_8(%arg0: i32) -> (i32, i32) {
    %c0_i32 = arith.constant 0 : i32
    %c0_i32_0 = arith.constant 0 : i32
    %c0_i32_1 = arith.constant 0 : i32
    return %c0_i32, %c0_i32_0 : i32, i32
  }
  func.func @transform_9(%arg0: i32) -> (i32, i32) {
    %c0_i32 = arith.constant 0 : i32
    %c0_i32_0 = arith.constant 0 : i32
    return %c0_i32, %arg0 : i32, i32
  }
}

</mosaic_0001>

<bundles_post_ra>
// kernel: tpu_custom_call.1
= control target key start
LH: loop header
LB: loop body
LE: loop exit
PB: predicated region body
PF: predicated region fallthrough
CT: control target
= control target key end

     0   :  { %14 = vsyncpa [#allocation3], 0  ;;  %s1819_s0 = inlined_call_operand.vmem [shape: f32[512,16], index: 0, kind: input, shape index: {}]   ;;  %s1820_s1 = inlined_call_operand.vmem [shape: f32[16,128], index: 1, kind: input, shape index: {}]   ;;  %s1821_s2 = inlined_call_operand.vmem [shape: f32[1,128], index: 2, kind: input, shape index: {}]   ;;  %s1822_s3 = inlined_call_operand.vmem [shape: f32[128,128], index: 3, kind: input, shape index: {}]   ;;  %s1823_s4 = inlined_call_operand.vmem [shape: f32[1,128], index: 4, kind: input, shape index: {}]   ;;  %s1824_s5 = inlined_call_operand.vmem [shape: f32[128,128], index: 5, kind: input, shape index: {}]   ;;  %s1825_s6 = inlined_call_operand.vmem [shape: f32[1,128], index: 6, kind: input, shape index: {}]   ;;  %s1826_s7 = inlined_call_operand.vmem [shape: f32[2,128], index: 7, kind: input, shape index: {}]   ;;  %s1827_s8 = inlined_call_operand.vmem [shape: f32[2,1], index: 8, kind: input, shape index: {}]   ;;  %s1828_s9 = inlined_call_operand.hbm [shape: f32[2,512], index: 9, kind: output, shape index: {}]  }
   0x1   :  { %16 = vsyncpa [#allocation3 + $0x1], 0  ;;  %s1550_s30 = smov 0   ;;  %s1552_s10 = smov 0  }
   0x2   :  { %s1554_s11 = smov 0   ;;  %s1556_s12 = smov 0  }
   0x3 LB: > { %s1571_s13 = sadd.s32 4294967295, %s1494_s12   ;;  %s1087_s14 = sadd.s32 4294967294, %s1494_s12   ;;  %s1494_s12 = sphi %s1556_s12, %s1834_s12   ;;  %s1490_s11 = sphi %s1554_s11, %s1833_s11   ;;  %s1486_s10 = sphi %s1552_s10, %s1832_s10   ;;  %s1482_s30 = sphi %s1550_s30, %s1831_s30  }
   0x4   : > { %s1575_s15 = sadd.s32 1, %s1494_s12   ;;  %s223_s16 = sadd.s32 1, %s1490_s11 }
   0x5   : > { %s220_s17 = ssub.s32 %s1494_s12, %s1575_s15  ;;  %p233_p0 = scmp.ne.s32.totalorder %s1490_s11, %s1486_s10 }
   0x6   : > { %p221_p1 = scmp.eq.s32.totalorder %s220_s17, 0  ;;  %p234_p2 = scmp.eq.s32.totalorder %s1571_s13, 3 }
   0x7   : > { %p239_p3 = scmp.ne.s32.totalorder %s1486_s10, %s1482_s30  ;;  %p240_p4 = scmp.eq.s32.totalorder %s1087_s14, 3 }
   0x8   : > { %s1586_s18 = scalar_select %p221_p1, %s1490_s11, %s223_s16  }
   0x9   : > { %p1588_p5 = por %p234_p2, %p233_p0  ;;  %p1592_p6 = por %p240_p4, %p239_p3 }
   0xa   : > { %p1090_p7 = scmp.ge.s32.totalorder %s1494_s12, 1  ;;  %p291_p8 = scmp.lt.s32.totalorder %s1494_s12, 5 }
   0xc   : > { %p292_p9 = pnand %p1090_p7, %p291_p8 }
   0xd   : > { %s1092_s25 = sshll.u32 (!%p292_p9), %s1571_s13, 4  ;;  %s324_s21 = sand.u32 (!%p292_p9), 1, %s1486_s10  }
   0xe   : > { %295 = sbr.rel (%p292_p9) target bundleno = 921 (0x399), region = 56  ;;  %p328_p10 = scmp.lt.s32.totalorder (!%p292_p9), %s1092_s25, 63 }
   0xf   : > { %s1114_s23 = sshll.u32 (!%p292_p9), %s1571_s13, 5  ;;  %s1015_s29 = scalar_lea.sflag (!%p292_p9), [#allocation3], %s324_s21 }
  0x10   : > { %s1499_s16 = smov (!%p292_p9), [#allocation2]  }
  0x11   : > { %s1438_s13 = sshll.u32 (!%p292_p9), %s1499_s16, 4  ;;  %s1439_s13 = int_to_ptr.vmem [resolvable:$false] %s1438_s13 }
  0x12   : > { %s1440_s17 = scalar_lea.vmem (!%p292_p9), %s1439_s13, 64 }
  0x13   : > { %v350_v0 = vld [vmem:[%s1820_s1 + $0x8] sm:$0xff]  ;;  %v349_v1 = vld [vmem:[%s1820_s1] sm:$0xff]  ;;  %v583_v2 = vld [vmem:[%s1822_s3 + $0x78] sm:$0xff]  ;;  %s1836_s25 = smov (!%p328_p10, %s1092_s25), 63  ;;  %vm358_vm0 = vcmask 130048   ;;  %vm1497_vm1 = vmmov 0  }
  0x14   : > { %1216 = vmatprep.subr.mxu0 %v350_v0  ;;  %1244 = vmatprep.subr.mxu1 %v583_v2  ;;  %v582_v3 = vld [vmem:[%s1822_s3 + $0x70] sm:$0xff]  ;;  %v581_v4 = vld [vmem:[%s1822_s3 + $0x68] sm:$0xff]  ;;  %v580_v5 = vld [vmem:[%s1822_s3 + $0x60] sm:$0xff]  ;;  %s1093_s22 = sshll.u32 %s1836_s25, 3  ;;  %s1784_s25 = scalar_lea.hbm %s1828_s9, %s1114_s23 }
  0x15   : > { %1217 = vmatpush3.msra.mxu0 %v350_v0  ;;  %1245 = vmatpush3.msra.mxu1 %v583_v2  ;;  %s1620_s26 = scalar_lea.vmem %s1819_s0, %s1093_s22  ;;  %v579_v6 = vld [vmem:[%s1822_s3 + $0x58] sm:$0xff]  ;;  %v578_v10 = vld [vmem:[%s1822_s3 + $0x50] sm:$0xff]  ;;  %v577_v12 = vld [vmem:[%s1822_s3 + $0x48] sm:$0xff]  ;;  %s1091_s22 = sshll.u32 %s324_s21, 1 }
  0x16   : > { %1218 = vmatprep.subr.mxu0 %v349_v1  ;;  %1246 = vmatprep.subr.mxu1 %v582_v3  ;;  %v333_v7 = vld [vmem:[%s1620_s26] sm:$0xff]  ;;  %v334_v8 = vld [vmem:[%s1620_s26 + $0x8] sm:$0xff]  ;;  %v335_v9 = vld [vmem:[%s1620_s26 + $0x10] sm:$0xff]  ;;  %s326_s24 = scalar_lea.vmem [#allocation2], %s1091_s22 }
  0x17   : > { %1219 = vmatpush3.msra.mxu0 %v349_v1  ;;  %1247 = vmatpush3.msra.mxu1 %v582_v3  ;;  %v336_v11 = vld [vmem:[%s1620_s26 + $0x18] sm:$0xff]  ;;  %v337_v13 = vld [vmem:[%s1620_s26 + $0x20] sm:$0xff]  ;;  %v338_v15 = vld [vmem:[%s1620_s26 + $0x28] sm:$0xff] }
  0x18   : > { %1248 = vmatprep.subr.mxu1 %v581_v4  ;;  %1220 = vmatprep.mubr.msk.f32.mxu0 %vm358_vm0, %v333_v7  ;;  %v576_v14 = vld [vmem:[%s1822_s3 + $0x40] sm:$0xff]  ;;  %v575_v16 = vld [vmem:[%s1822_s3 + $0x38] sm:$0xff]  ;;  %v339_v17 = vld [vmem:[%s1620_s26 + $0x30] sm:$0xff] }
  0x19   : > { %1249 = vmatpush3.msra.mxu1 %v581_v4  ;;  %1221 = vmatmul.mubr.msk.f32.vlgmr.msra.gmra.mxu0 %vm358_vm0, %v334_v8  ;;  %v574_v18 = vld [vmem:[%s1822_s3 + $0x30] sm:$0xff]  ;;  %v340_v19 = vld [vmem:[%s1620_s26 + $0x38] sm:$0xff]  ;;  %v573_v20 = vld [vmem:[%s1822_s3 + $0x28] sm:$0xff] }
  0x1a   : > { %1250 = vmatprep.subr.mxu1 %v580_v5  ;;  %1223 = vmatprep.mubr.msk.f32.mxu0 %vm358_vm0, %v335_v9  ;;  %v341_v21 = vld [vmem:[%s1620_s26 + $0x40] sm:$0xff]  ;;  %v342_v23 = vld [vmem:[%s1620_s26 + $0x48] sm:$0xff]  ;;  %v343_v24 = vld [vmem:[%s1620_s26 + $0x50] sm:$0xff] }
  0x1b   : > { %1251 = vmatpush3.msra.mxu1 %v580_v5  ;;  %v572_v22 = vld [vmem:[%s1822_s3 + $0x20] sm:$0xff]  ;;  %v344_v25 = vld [vmem:[%s1620_s26 + $0x58] sm:$0xff]  ;;  %v346_v27 = vld [vmem:[%s1620_s26 + $0x68] sm:$0xff] }
  0x1c   : > { %1252 = vmatprep.subr.mxu1 %v579_v6  ;;  %v345_v26 = vld [vmem:[%s1620_s26 + $0x60] sm:$0xff]  ;;  %v347_v28 = vld [vmem:[%s1620_s26 + $0x70] sm:$0xff]  ;;  %v348_v29 = vld [vmem:[%s1620_s26 + $0x78] sm:$0xff]  ;;  %s1028_s26 = sshll.u32 %s326_s24, 4  ;;  %s1029_s26 = int_to_ptr.vmem [resolvable:$true] %s1028_s26 }
  0x1d   : > { %1253 = vmatpush3.msra.mxu1 %v579_v6  ;;  %1224 = vmatmul.mubr.msk.f32.gmra.mxu0 %vm358_vm0, %v336_v11  ;;  %v571_v30 = vld [vmem:[%s1822_s3 + $0x18] sm:$0xff]  ;;  %v570_v31 = vld [vmem:[%s1822_s3 + $0x10] sm:$0xff]  ;;  %v569_v32 = vld [vmem:[%s1822_s3 + $0x8] sm:$0xff]  ;;  %s1434_s14 = scalar_lea.vmem %s1029_s26, 32  ;;  %p1441_p0 = scmp.lt.s32.totalorder %s1029_s26, %s1439_s13 }
  0x1e   : > { %1254 = vmatprep.subr.mxu1 %v578_v10  ;;  %1226 = vmatprep.mubr.msk.f32.mxu0 %vm358_vm0, %v337_v13  ;;  %v568_v33 = vld [vmem:[%s1822_s3] sm:$0xff]  ;;  %v767_v34 = vld [vmem:[%s1824_s5 + $0x78] sm:$0xff]  ;;  %v766_v35 = vld [vmem:[%s1824_s5 + $0x70] sm:$0xff]  ;;  %p1435_p11 = scmp.ne.s32.totalorder %s1029_s26, %s1434_s14  ;;  %p1442_p1 = scmp.lt.s32.totalorder %s1440_s17, %s1434_s14 }
  0x1f   : > { %1255 = vmatpush3.msra.mxu1 %v578_v10  ;;  %1300 = vmatprep.subr.mxu0 %v767_v34  ;;  %v765_v36 = vld [vmem:[%s1824_s5 + $0x68] sm:$0xff]  ;;  %v764_v37 = vld [vmem:[%s1824_s5 + $0x60] sm:$0xff]  ;;  %v763_v38 = vld [vmem:[%s1824_s5 + $0x58] sm:$0xff] }
  0x20   : > { %1256 = vmatprep.subr.mxu1 %v577_v12  ;;  %1301 = vmatpush3.msra.mxu0 %v767_v34  ;;  %v762_v39 = vld [vmem:[%s1824_s5 + $0x50] sm:$0xff]  ;;  %v761_v40 = vld [vmem:[%s1824_s5 + $0x48] sm:$0xff]  ;;  %v760_v41 = vld [vmem:[%s1824_s5 + $0x40] sm:$0xff]  ;;  %p1436_p12 = pnand %p1435_p11, %p1588_p5  ;;  %p1443_p2 = por %p1442_p1, %p1441_p0 }
  0x21   : > { %1257 = vmatpush3.msra.mxu1 %v577_v12  ;;  %1227 = vmatmul.mubr.msk.f32.gmra.mxu0 %vm358_vm0, %v338_v15  ;;  %v759_v42 = vld [vmem:[%s1824_s5 + $0x38] sm:$0xff]  ;;  %v758_v43 = vld [vmem:[%s1824_s5 + $0x30] sm:$0xff]  ;;  %v757_v44 = vld [vmem:[%s1824_s5 + $0x28] sm:$0xff] }
  0x22   : > { %1258 = vmatprep.subr.mxu1 %v576_v14  ;;  %1229 = vmatprep.mubr.msk.f32.mxu0 %vm358_vm0, %v339_v17  ;;  %v756_v45 = vld [vmem:[%s1824_s5 + $0x20] sm:$0xff]  ;;  %v755_v46 = vld [vmem:[%s1824_s5 + $0x18] sm:$0xff]  ;;  %p1437_p13 = pneg %p1436_p12 }
  0x23   : > { %1259 = vmatpush3.msra.mxu1 %v576_v14  ;;  %1302 = vmatprep.subr.mxu0 %v766_v35  ;;  %v1094_v47 = vld [vmem:[%s1821_s2] ss:$0 sm:$0xff] }
  0x24   : > { %1260 = vmatprep.subr.mxu1 %v575_v16  ;;  %1303 = vmatpush3.msra.mxu0 %v766_v35  ;;  %v752_v34 = vld [vmem:[%s1824_s5] sm:$0xff]  ;;  %p1444_p3 = pnand %p1443_p2, %p1437_p13 }
  0x25   : > { %1261 = vmatpush3.msra.mxu1 %v575_v16  ;;  %1230 = vmatmul.mubr.msk.f32.gmra.mxu0 %vm358_vm0, %v340_v19  ;;  %v1111_v35 = vld [vmem:[%s1823_s4] ss:$0 sm:$0xff] }
  0x26   : > { %1262 = vmatprep.subr.mxu1 %v574_v18  ;;  %1232 = vmatprep.mubr.msk.f32.mxu0 %vm358_vm0, %v341_v21 }
  0x27   : > { %1263 = vmatpush3.msra.mxu1 %v574_v18  ;;  %1304 = vmatprep.subr.mxu0 %v765_v36 }
  0x28   : > { %1264 = vmatprep.subr.mxu1 %v573_v20  ;;  %1305 = vmatpush3.msra.mxu0 %v765_v36 }
  0x29   : > { %1265 = vmatpush3.msra.mxu1 %v573_v20  ;;  %1233 = vmatmul.mubr.msk.f32.gmra.mxu0 %vm358_vm0, %v342_v23 }
  0x2a   : > { %1266 = vmatprep.subr.mxu1 %v572_v22  ;;  %1235 = vmatprep.mubr.msk.f32.mxu0 %vm358_vm0, %v343_v24 }
  0x2b   : > { %1267 = vmatpush3.msra.mxu1 %v572_v22  ;;  %1306 = vmatprep.subr.mxu0 %v764_v37 }
  0x2c   : > { %1268 = vmatprep.subr.mxu1 %v571_v30  ;;  %1307 = vmatpush3.msra.mxu0 %v764_v37 }
  0x2d   : > { %1236 = vmatmul.mubr.msk.f32.gmra.mxu0 %vm358_vm0, %v344_v25  ;;  %1269 = vmatpush3.msra.mxu1 %v571_v30 }
  0x2e   : > { %1238 = vmatprep.mubr.msk.f32.mxu0 %vm358_vm0, %v345_v26  ;;  %1270 = vmatprep.subr.mxu1 %v570_v31 }
  0x2f   : > { %1271 = vmatpush3.msra.mxu1 %v570_v31  ;;  %1308 = vmatprep.subr.mxu0 %v763_v38 }
  0x30   : > { %1272 = vmatprep.subr.mxu1 %v569_v32  ;;  %1309 = vmatpush3.msra.mxu0 %v763_v38 }
  0x31   : > { %1239 = vmatmul.mubr.msk.f32.gmra.mxu0 %vm358_vm0, %v346_v27  ;;  %1273 = vmatpush3.msra.mxu1 %v569_v32  ;;  %v754_v32 = vld [vmem:[%s1824_s5 + $0x10] sm:$0xff] }
  0x32   : > { %1241 = vmatprep.mubr.msk.f32.mxu0 %vm358_vm0, %v347_v28  ;;  %1274 = vmatprep.subr.mxu1 %v568_v33 }
  0x33   : > { %1275 = vmatpush3.msra.mxu1 %v568_v33  ;;  %1310 = vmatprep.subr.mxu0 %v762_v39  ;;  %v753_v33 = vld [vmem:[%s1824_s5 + $0x8] sm:$0xff] }
  0x34   : > { %1311 = vmatpush3.msra.mxu0 %v762_v39 }
  0x35   : > { %1242 = vmatmul.mubr.msk.f32.gmra.mxu0 %vm358_vm0, %v348_v29  ;;  %1312 = vmatprep.subr.mxu0 %v761_v40 }
  0x36   : > { %1313 = vmatpush3.msra.mxu0 %v761_v40 }
  0x37   : > { %1314 = vmatprep.subr.mxu0 %v760_v41 }
  0x38   : > { %1315 = vmatpush3.msra.mxu0 %v760_v41 }
  0x39   : > { %1316 = vmatprep.subr.mxu0 %v759_v42 }
  0x3a   : > { %1317 = vmatpush3.msra.mxu0 %v759_v42 }
  0x3b   : > { %1318 = vmatprep.subr.mxu0 %v758_v43 }
  0x3c   : > { %1319 = vmatpush3.msra.mxu0 %v758_v43 }
  0x3d   : > { %1320 = vmatprep.subr.mxu0 %v757_v44 }
  0x3e   : > { %1321 = vmatpush3.msra.mxu0 %v757_v44 }
  0x3f   : > { %1322 = vmatprep.subr.mxu0 %v756_v45 }
  0x40   : > { %1323 = vmatpush3.msra.mxu0 %v756_v45 }
  0x41   : > { %1324 = vmatprep.subr.mxu0 %v755_v46 }
  0x42   : > { %1325 = vmatpush3.msra.mxu0 %v755_v46 }
  0x43   : > { %1326 = vmatprep.subr.mxu0 %v754_v32 }
  0x44   : > { %1327 = vmatpush3.msra.mxu0 %v754_v32 }
  0x45   : > { %1328 = vmatprep.subr.mxu0 %v753_v33 }
  0x46   : > { %1329 = vmatpush3.msra.mxu0 %v753_v33 }
  0x47   : > { %1330 = vmatprep.subr.mxu0 %v752_v34 }
  0x48   : > { %1331 = vmatpush3.msra.mxu0 %v752_v34 }
  0xd9   : > { %v1222_v48 = vpop.f32.mrf.mxu0 }
  0xda   : > { %v479_v49 = vadd.f32 %v1222_v48, %v1094_v47 }
  0xdb   : > { %v473_v50 = vpop.f32.mrf.mxu0 }
  0xdc   : > { %v474_v51 = vadd.f32 %v1094_v47, %v473_v50  ;;  %v553_v54 = vmax.f32 %v479_v49, 0.0 }
  0xdd   : > { %v1225_v52 = vpop.f32.mrf.mxu0 }
  0xde   : > { %v552_v53 = vmax.f32 %v474_v51, 0.0  ;;  %v489_v55 = vadd.f32 %v1225_v52, %v1094_v47 }
  0xdf   : > { %v483_v56 = vpop.f32.mrf.mxu0 }
  0xe0   : > { %v484_v57 = vadd.f32 %v1094_v47, %v483_v56  ;;  %1276 = vmatprep.mubr.f32.mxu1 %v552_v53  ;;  %v555_v60 = vmax.f32 %v489_v55, 0.0 }
  0xe1   : > { %v1228_v58 = vpop.f32.mrf.mxu0  ;;  %1277 = vmatmul.mubr.f32.vlgmr.msra.gmra.mxu1 %v553_v54 }
  0xe2   : > { %v554_v59 = vmax.f32 %v484_v57, 0.0  ;;  %v499_v61 = vadd.f32 %v1228_v58, %v1094_v47 }
  0xe3   : > { %v493_v62 = vpop.f32.mrf.mxu0 }
  0xe4   : > { %v494_v63 = vadd.f32 %v1094_v47, %v493_v62  ;;  %1279 = vmatprep.mubr.f32.mxu1 %v554_v59  ;;  %v557_v2 = vmax.f32 %v499_v61, 0.0 }
  0xe5   : > { %v1231_v0 = vpop.f32.mrf.mxu0  ;;  %1280 = vmatmul.mubr.f32.gmra.mxu1 %v555_v60 }
  0xe6   : > { %v556_v1 = vmax.f32 %v494_v63, 0.0  ;;  %v509_v3 = vadd.f32 %v1231_v0, %v1094_v47 }
  0xe7   : > { %v503_v4 = vpop.f32.mrf.mxu0 }
  0xe8   : > { %v504_v5 = vadd.f32 %v1094_v47, %v503_v4  ;;  %1282 = vmatprep.mubr.f32.mxu1 %v556_v1  ;;  %v559_v8 = vmax.f32 %v509_v3, 0.0 }
  0xe9   : > { %v1234_v6 = vpop.f32.mrf.mxu0  ;;  %1283 = vmatmul.mubr.f32.gmra.mxu1 %v557_v2 }
  0xea   : > { %v558_v7 = vmax.f32 %v504_v5, 0.0  ;;  %v519_v9 = vadd.f32 %v1234_v6, %v1094_v47 }
  0xeb   : > { %v513_v10 = vpop.f32.mrf.mxu0 }
  0xec   : > { %v514_v11 = vadd.f32 %v1094_v47, %v513_v10  ;;  %1285 = vmatprep.mubr.f32.mxu1 %v558_v7  ;;  %v561_v14 = vmax.f32 %v519_v9, 0.0 }
  0xed   : > { %v1237_v12 = vpop.f32.mrf.mxu0  ;;  %1286 = vmatmul.mubr.f32.gmra.mxu1 %v559_v8 }
  0xee   : > { %v560_v13 = vmax.f32 %v514_v11, 0.0  ;;  %v529_v15 = vadd.f32 %v1237_v12, %v1094_v47 }
  0xef   : > { %v523_v16 = vpop.f32.mrf.mxu0 }
  0xf0   : > { %v524_v17 = vadd.f32 %v1094_v47, %v523_v16  ;;  %1288 = vmatprep.mubr.f32.mxu1 %v560_v13  ;;  %v563_v20 = vmax.f32 %v529_v15, 0.0 }
  0xf1   : > { %v1240_v18 = vpop.f32.mrf.mxu0  ;;  %1289 = vmatmul.mubr.f32.gmra.mxu1 %v561_v14 }
  0xf2   : > { %v562_v19 = vmax.f32 %v524_v17, 0.0  ;;  %v539_v21 = vadd.f32 %v1240_v18, %v1094_v47 }
  0xf3   : > { %v533_v22 = vpop.f32.mrf.mxu0 }
  0xf4   : > { %v534_v23 = vadd.f32 %v1094_v47, %v533_v22  ;;  %1291 = vmatprep.mubr.f32.mxu1 %v562_v19  ;;  %v565_v26 = vmax.f32 %v539_v21, 0.0  ;;  %v937_v21 = vld [vmem:[%s1827_s8] sm:$0x3]  ;;  %v1498_v22 = vmov 0  }
  0xf5   : > { %v1243_v24 = vpop.f32.mrf.mxu0  ;;  %1292 = vmatmul.mubr.f32.gmra.mxu1 %v563_v20  ;;  %v1496_v20 = vmov 0.0   ;;  %1433 = vset.pattern.permute.xlu0 %v1498_v22 }
  0xf6   : > { %v564_v25 = vmax.f32 %v534_v23, 0.0  ;;  %v549_v27 = vadd.f32 %v1243_v24, %v1094_v47  ;;  %1356 = vmatprep.subr.mxu1 %v1496_v20  ;;  %940 = vperm.xlu0 %1433, %v937_v21  }
  0xf7   : > { %v543_v28 = vpop.f32.mrf.mxu0 }
  0xf8   : > { %v544_v29 = vadd.f32 %v1094_v47, %v543_v28  ;;  %1294 = vmatprep.mubr.f32.mxu1 %v564_v25  ;;  %v567_v31 = vmax.f32 %v549_v27, 0.0 }
  0xf9   : > { %1295 = vmatmul.mubr.f32.gmra.mxu1 %v565_v26 }
  0xfa   : > { %v566_v30 = vmax.f32 %v544_v29, 0.0 }
  0xfc   : > { %1297 = vmatprep.mubr.f32.mxu1 %v566_v30 }
  0xfd   : > { %1298 = vmatmul.mubr.f32.gmra.mxu1 %v567_v31 }
  0xfe   : > { %1388 = vmatprep.mubr.msk.f32.mxu1 %vm1497_vm1, %v1496_v20 }
 0x1a1   : > { %v1278_v36 = vpop.f32.mrf.mxu1 }
 0x1a2   : > { %v663_v37 = vadd.f32 %v1278_v36, %v1111_v35 }
 0x1a3   : > { %v657_v38 = vpop.f32.mrf.mxu1 }
 0x1a4   : > { %v658_v39 = vadd.f32 %v1111_v35, %v657_v38  ;;  %v737_v42 = vmax.f32 %v663_v37, 0.0  ;;  %v1112_v37 = vld [vmem:[%s1825_s6] ss:$0 sm:$0xff] }
 0x1a5   : > { %v1281_v40 = vpop.f32.mrf.mxu1 }
 0x1a6   : > { %v736_v41 = vmax.f32 %v658_v39, 0.0  ;;  %v673_v43 = vadd.f32 %v1281_v40, %v1111_v35 }
 0x1a7   : > { %v667_v44 = vpop.f32.mrf.mxu1 }
 0x1a8   : > { %v668_v45 = vadd.f32 %v1111_v35, %v667_v44  ;;  %1332 = vmatprep.mubr.f32.mxu0 %v736_v41  ;;  %v739_v48 = vmax.f32 %v673_v43, 0.0 }
 0x1a9   : > { %v1284_v46 = vpop.f32.mrf.mxu1  ;;  %1333 = vmatmul.mubr.f32.vlgmr.msra.gmra.mxu0 %v737_v42 }
 0x1aa   : > { %v738_v47 = vmax.f32 %v668_v45, 0.0  ;;  %v683_v49 = vadd.f32 %v1284_v46, %v1111_v35 }
 0x1ab   : > { %v677_v50 = vpop.f32.mrf.mxu1 }
 0x1ac   : > { %v678_v51 = vadd.f32 %v1111_v35, %v677_v50  ;;  %1335 = vmatprep.mubr.f32.mxu0 %v738_v47  ;;  %v741_v54 = vmax.f32 %v683_v49, 0.0 }
 0x1ad   : > { %v1287_v52 = vpop.f32.mrf.mxu1  ;;  %1336 = vmatmul.mubr.f32.gmra.mxu0 %v739_v48 }
 0x1ae   : > { %v740_v53 = vmax.f32 %v678_v51, 0.0  ;;  %v693_v55 = vadd.f32 %v1287_v52, %v1111_v35 }
 0x1af   : > { %v687_v56 = vpop.f32.mrf.mxu1 }
 0x1b0   : > { %v688_v57 = vadd.f32 %v1111_v35, %v687_v56  ;;  %1338 = vmatprep.mubr.f32.mxu0 %v740_v53  ;;  %v743_v60 = vmax.f32 %v693_v55, 0.0 }
 0x1b1   : > { %v1290_v58 = vpop.f32.mrf.mxu1  ;;  %1339 = vmatmul.mubr.f32.gmra.mxu0 %v741_v54 }
 0x1b2   : > { %v742_v59 = vmax.f32 %v688_v57, 0.0  ;;  %v703_v61 = vadd.f32 %v1290_v58, %v1111_v35 }
 0x1b3   : > { %v697_v62 = vpop.f32.mrf.mxu1 }
 0x1b4   : > { %v698_v63 = vadd.f32 %v1111_v35, %v697_v62  ;;  %1341 = vmatprep.mubr.f32.mxu0 %v742_v59  ;;  %v745_v2 = vmax.f32 %v703_v61, 0.0 }
 0x1b5   : > { %v1293_v0 = vpop.f32.mrf.mxu1  ;;  %1342 = vmatmul.mubr.f32.gmra.mxu0 %v743_v60 }
 0x1b6   : > { %v744_v1 = vmax.f32 %v698_v63, 0.0  ;;  %v713_v3 = vadd.f32 %v1293_v0, %v1111_v35 }
 0x1b7   : > { %v707_v4 = vpop.f32.mrf.mxu1 }
 0x1b8   : > { %v708_v5 = vadd.f32 %v1111_v35, %v707_v4  ;;  %1344 = vmatprep.mubr.f32.mxu0 %v744_v1  ;;  %v747_v8 = vmax.f32 %v713_v3, 0.0 }
 0x1b9   : > { %v1296_v6 = vpop.f32.mrf.mxu1  ;;  %1345 = vmatmul.mubr.f32.gmra.mxu0 %v745_v2 }
 0x1ba   : > { %v746_v7 = vmax.f32 %v708_v5, 0.0  ;;  %v723_v9 = vadd.f32 %v1296_v6, %v1111_v35 }
 0x1bb   : > { %v717_v10 = vpop.f32.mrf.mxu1 }
 0x1bc   : > { %v718_v11 = vadd.f32 %v1111_v35, %v717_v10  ;;  %1347 = vmatprep.mubr.f32.mxu0 %v746_v7  ;;  %v749_v14 = vmax.f32 %v723_v9, 0.0  ;;  %v941_v9 = vpop.permute.xlu0 %940 }
 0x1bd   : > { %v1299_v12 = vpop.f32.mrf.mxu1  ;;  %1348 = vmatmul.mubr.f32.gmra.mxu0 %v747_v8  ;;  %v936_v8 = vld [vmem:[%s1826_s7] sm:$0x3] }
 0x1be   : > { %v748_v13 = vmax.f32 %v718_v11, 0.0  ;;  %v733_v15 = vadd.f32 %v1299_v12, %v1111_v35 }
 0x1bf   : > { %v727_v16 = vpop.f32.mrf.mxu1 }
 0x1c0   : > { %v728_v17 = vadd.f32 %v1111_v35, %v727_v16  ;;  %1350 = vmatprep.mubr.f32.mxu0 %v748_v13  ;;  %v751_v19 = vmax.f32 %v733_v15, 0.0 }
 0x1c1   : > { %1351 = vmatmul.mubr.f32.gmra.mxu0 %v749_v14 }
 0x1c2   : > { %v750_v18 = vmax.f32 %v728_v17, 0.0 }
 0x1c4   : > { %1353 = vmatprep.mubr.f32.mxu0 %v750_v18 }
 0x1c5   : > { %1354 = vmatmul.mubr.f32.gmra.mxu0 %v751_v19 }
 0x269   : > { %v1749_v23 = vpop.f32.mrf.mxu0 }
 0x26a   : > { %v847_v3 = vadd.f32 %v1749_v23, %v1112_v37 }
 0x26b   : > { %v1751_v24 = vpop.f32.mrf.mxu0 }
 0x26c   : > { %v921_v5 = vmax.f32 %v847_v3, 0.0  ;;  %v842_v6 = vadd.f32 %v1112_v37, %v1751_v24 }
 0x26d   : > { %v1337_v25 = vpop.f32.mrf.mxu0 }
 0x26e   : > { %v857_v63 = vadd.f32 %v1337_v25, %v1112_v37  ;;  %v920_v7 = vmax.f32 %v842_v6, 0.0 }
 0x26f   : > { %v1753_v26 = vpop.f32.mrf.mxu0 }
 0x270   : > { %v923_v1 = vmax.f32 %v857_v63, 0.0  ;;  %v852_v2 = vadd.f32 %v1112_v37, %v1753_v26 }
 0x271   : > { %v1340_v27 = vpop.f32.mrf.mxu0 }
 0x272   : > { %v867_v59 = vadd.f32 %v1340_v27, %v1112_v37  ;;  %v922_v4 = vmax.f32 %v852_v2, 0.0 }
 0x273   : > { %v861_v28 = vpop.f32.mrf.mxu0 }
 0x274   : > { %v925_v61 = vmax.f32 %v867_v59, 0.0  ;;  %v862_v62 = vadd.f32 %v1112_v37, %v861_v28 }
 0x275   : > { %v1343_v29 = vpop.f32.mrf.mxu0 }
 0x276   : > { %v877_v55 = vadd.f32 %v1343_v29, %v1112_v37  ;;  %v924_v0 = vmax.f32 %v862_v62, 0.0 }
 0x277   : > { %v871_v30 = vpop.f32.mrf.mxu0 }
 0x278   : > { %v927_v57 = vmax.f32 %v877_v55, 0.0  ;;  %v872_v58 = vadd.f32 %v1112_v37, %v871_v30 }
 0x279   : > { %v1346_v31 = vpop.f32.mrf.mxu0 }
 0x27a   : > { %v887_v51 = vadd.f32 %v1346_v31, %v1112_v37  ;;  %v926_v60 = vmax.f32 %v872_v58, 0.0 }
 0x27b   : > { %v881_v32 = vpop.f32.mrf.mxu0 }
 0x27c   : > { %v929_v53 = vmax.f32 %v887_v51, 0.0  ;;  %v882_v54 = vadd.f32 %v1112_v37, %v881_v32 }
 0x27d   : > { %v1349_v33 = vpop.f32.mrf.mxu0 }
 0x27e   : > { %v897_v47 = vadd.f32 %v1349_v33, %v1112_v37  ;;  %v928_v56 = vmax.f32 %v882_v54, 0.0 }
 0x27f   : > { %v891_v34 = vpop.f32.mrf.mxu0 }
 0x280   : > { %v931_v49 = vmax.f32 %v897_v47, 0.0  ;;  %v892_v50 = vadd.f32 %v1112_v37, %v891_v34 }
 0x281   : > { %v1352_v35 = vpop.f32.mrf.mxu0 }
 0x282   : > { %v907_v43 = vadd.f32 %v1352_v35, %v1112_v37  ;;  %v930_v52 = vmax.f32 %v892_v50, 0.0 }
 0x283   : > { %v901_v36 = vpop.f32.mrf.mxu0 }
 0x284   : > { %v933_v45 = vmax.f32 %v907_v43, 0.0  ;;  %v902_v46 = vadd.f32 %v1112_v37, %v901_v36 }
 0x285   : > { %v1355_v38 = vpop.f32.mrf.mxu0 }
 0x286   : > { %v917_v39 = vadd.f32 %v1355_v38, %v1112_v37  ;;  %v932_v48 = vmax.f32 %v902_v46, 0.0 }
 0x287   : > { %v911_v40 = vpop.f32.mrf.mxu0 }
 0x288   : > { %v935_v41 = vmax.f32 %v917_v39, 0.0  ;;  %v912_v42 = vadd.f32 %v1112_v37, %v911_v40 }
 0x28a   : > { %1357 = vmatpush3.xpose.msra.mxu1 %v935_v41  ;;  %v934_v44 = vmax.f32 %v912_v42, 0.0 }
 0x28b   : > { %1358 = vmatprep.subr.mxu1 %v1496_v20 }
 0x28e   : > { %1359 = vmatpush3.xpose.msra.mxu1 %v934_v44 }
 0x28f   : > { %1360 = vmatprep.subr.mxu1 %v1496_v20 }
 0x292   : > { %1361 = vmatpush3.xpose.msra.mxu1 %v933_v45 }
 0x293   : > { %1362 = vmatprep.subr.mxu1 %v1496_v20 }
 0x296   : > { %1363 = vmatpush3.xpose.msra.mxu1 %v932_v48 }
 0x297   : > { %1364 = vmatprep.subr.mxu1 %v1496_v20 }
 0x29a   : > { %1365 = vmatpush3.xpose.msra.mxu1 %v931_v49 }
 0x29b   : > { %1366 = vmatprep.subr.mxu1 %v1496_v20 }
 0x29e   : > { %1367 = vmatpush3.xpose.msra.mxu1 %v930_v52 }
 0x29f   : > { %1368 = vmatprep.subr.mxu1 %v1496_v20 }
 0x2a2   : > { %1369 = vmatpush3.xpose.msra.mxu1 %v929_v53 }
 0x2a3   : > { %1370 = vmatprep.subr.mxu1 %v1496_v20 }
 0x2a6   : > { %1371 = vmatpush3.xpose.msra.mxu1 %v928_v56 }
 0x2a7   : > { %1372 = vmatprep.subr.mxu1 %v1496_v20 }
 0x2aa   : > { %1373 = vmatpush3.xpose.msra.mxu1 %v927_v57 }
 0x2ab   : > { %1374 = vmatprep.subr.mxu1 %v1496_v20 }
 0x2ae   : > { %1375 = vmatpush3.xpose.msra.mxu1 %v926_v60 }
 0x2af   : > { %1376 = vmatprep.subr.mxu1 %v1496_v20 }
 0x2b2   : > { %1377 = vmatpush3.xpose.msra.mxu1 %v925_v61 }
 0x2b3   : > { %1378 = vmatprep.subr.mxu1 %v1496_v20 }
 0x2b6   : > { %1379 = vmatpush3.xpose.msra.mxu1 %v924_v0 }
 0x2b7   : > { %1380 = vmatprep.subr.mxu1 %v1496_v20 }
 0x2ba   : > { %1381 = vmatpush3.xpose.msra.mxu1 %v923_v1 }
 0x2bb   : > { %1382 = vmatprep.subr.mxu1 %v1496_v20 }
 0x2be   : > { %1383 = vmatpush3.xpose.msra.mxu1 %v922_v4 }
 0x2bf   : > { %1384 = vmatprep.subr.mxu1 %v1496_v20 }
 0x2c2   : > { %1385 = vmatpush3.xpose.msra.mxu1 %v921_v5 }
 0x2c3   : > { %1386 = vmatprep.subr.mxu1 %v1496_v20 }
 0x2c6   : > { %1387 = vmatpush3.xpose.msra.mxu1 %v920_v7 }
 0x2c9   : > { %1389 = vmatmul.mubr.f32.vlgmr.msra.gmra.mxu1 %v936_v8 }
 0x389   : > { %v1009_v10 = vpop.f32.mrf.mxu1 }
 0x38a   : > { %v1010_v11 = vadd.f32 %v1009_v10, %v941_v9 }
 0x38b   : > { %v1390_v12 = vpop.f32.mrf.mxu1 }
 0x38c   : > { %1013 = vst [vmem:[%s326_s24] sm:$0x3] %v1010_v11 }
 0x38d   : > { %1447 = shalt.err (!%p1444_p3)
}
 0x38e   : > { %s1448_s22 = scalar_lea.hbm %s1784_s25, 32  ;;  %s1452_s24 = scalar_lea.hbm %s1828_s9, 128 }
 0x38f   : > { %p1449_p4 = scmp.ne.s32.totalorder %s1784_s25, %s1448_s22  ;;  %p1453_p9 = scmp.lt.s32.totalorder %s1784_s25, %s1828_s9 }
 0x390   : > { %p1454_p10 = scmp.lt.s32.totalorder %s1452_s24, %s1448_s22 }
 0x391   : > { %p1450_p7 = pnand %p1449_p4, %p1588_p5 }
 0x392   : > { %p1455_p11 = por %p1454_p10, %p1453_p9 }
 0x393   : > { %p1451_p8 = pneg %p1450_p7 }
 0x395   : > { %p1456_p12 = pnand %p1455_p11, %p1451_p8 }
 0x397   : > { %1459 = shalt.err (!%p1456_p12)
}
 0x398   : > { %1391 = dma.vmem_to_hbm [thread:$0]  (%p1588_p5), %s1029_s26, 32, %s1784_s25, %s1015_s29  }
 0x399 PF: > { %p1397_p13 = scmp.ge.s32.totalorder %s1494_s12, 2  ;;  %s1040_s14 = sand.u32 1, %s1482_s30  }
 0x39a   : > { %s1041_s16 = scalar_lea.sflag [#allocation3], %s1040_s14 }
 0x39b   : > { %p1394_p0 = pnand %p1397_p13, %p1592_p6 }
 0x39d   : > { %p1395_p1 = pneg %p1394_p0 }
 0x39f   : > { %1477 = dma.done.wait (%p1395_p1), %s1041_s16, 32  }
 0x3a0   : > { %1479 = vsyncadd (%p1395_p1), %s1041_s16, 4294967264  ;;  %p19_p2 = scmp.ge.s32.totalorder %s1575_s15, 6   ;;  %s1831_s30 = smov %s1486_s10 }
 0x3a1   : > { %s1832_s10 = smov %s1490_s11  ;;  %s1833_s11 = smov %s1586_s18 }
 0x3a2   : > { %s1834_s12 = smov %s1575_s15  ;;  %21 = sbr.rel (!%p19_p2) target bundleno = 3 (0x3), region = 91 }
 0x3a7   :  { %1046 = vsyncpa [#allocation3], 1 }
 0x3a8   :  { %1048 = vsyncpa [#allocation3 + $0x1], 1 }

</bundles_post_ra>
